<compile_context>
chip_gen: v5e
topology: v5e:2x2
jax: 0.10.0
libtpu: 0.0.40
codegen_flags: <defaults>
</compile_context>

<pallas_src>
import functools

import jax
import jax.numpy as jnp
from jax.experimental import pallas as pl
from jax.experimental.pallas import tpu as pltpu


def _round_up(x, m):
    return ((x + m - 1) // m) * m


def _choose_tm(m, tm_max=512):
    """Row-tile size: >=2 grid steps for m>64, capped, 8-row aligned."""
    if m <= 0:
        return 8
    if m <= 64:
        return _round_up(m, 8)
    n_tiles = max(2, -(-m // tm_max))
    return max(8, _round_up(-(-m // n_tiles), 8))


def _vae_mlp_kernel(x_ref,
                    w1_ref, b1_ref,
                    w2_ref, b2_ref,
                    w3_ref, b3_ref,
                    whead_ref, bhead_ref,
                    eps_ref,
                    out_ref,
                    *, out_dim_pad, compute_dtype):
    f32 = jnp.float32
    x = x_ref[...].astype(compute_dtype)

    # fc1 -> tanh, fc2 -> tanh, fc3 -> tanh (dot on MXU, bias add on VPU,
    # tanh on EUP). Accumulation always f32.
    h = jnp.tanh(jnp.dot(x, w1_ref[...],
                         preferred_element_type=f32) + b1_ref[...])
    h = jnp.tanh(jnp.dot(h.astype(compute_dtype), w2_ref[...],
                         preferred_element_type=f32) + b2_ref[...])
    h = jnp.tanh(jnp.dot(h.astype(compute_dtype), w3_ref[...],
                         preferred_element_type=f32) + b3_ref[...])

    # Fused, lane-padded mu/logvar head: W_head = [Wmu|0 | Wlv|0].
    head = jnp.dot(h.astype(compute_dtype), whead_ref[...],
                   preferred_element_type=f32) + bhead_ref[...]
    mu = head[:, :out_dim_pad]           # lane-aligned slice
    lv = head[:, out_dim_pad:]           # lane-aligned slice

    # reparameterize: z = mu + eps * exp(0.5 * logvar)
    z = mu + eps_ref[...] * jnp.exp(0.5 * lv)

    # Two direct lane-aligned stores (no in-kernel concatenate).
    out_ref[:, :2 * out_dim_pad] = head
    out_ref[:, 2 * out_dim_pad:] = z


def autoencoder_forward(x, params, eps, weights_dtype=jnp.float32, tm_max=512):
    """Forward pass of AutoencoderModel.forward.

    x:      (..., input_dim) float32
    params: dict of weights (in, out) and biases (1, out)
    eps:    (..., proj_dim * n_comp) float32  -- the randn_like draw
    returns (z, mu, logvar), each (..., proj_dim, n_comp)
    """
    proj_dim = params["proj_dim"]
    n_comp = params["n_comp"]
    lead = x.shape[:-1]
    input_dim = x.shape[-1]
    out_dim = proj_dim * n_comp
    out_dim_pad = _round_up(out_dim, 128)
    shp = (*lead, proj_dim, n_comp)

    x2 = x.reshape(-1, input_dim).astype(jnp.float32)
    eps2 = eps.reshape(-1, out_dim).astype(jnp.float32)
    m = x2.shape[0]
    if m == 0:  # empty-batch guard
        empty = jnp.zeros(shp, jnp.float32)
        return empty, empty, empty

    compute_dtype = jnp.dtype(weights_dtype)
    w1 = params["w1"].astype(compute_dtype)
    w2 = params["w2"].astype(compute_dtype)
    w3 = params["w3"].astype(compute_dtype)
    pad_cols = out_dim_pad - out_dim
    wmu_p = jnp.pad(params["wmu"], ((0, 0), (0, pad_cols)))
    wlv_p = jnp.pad(params["wlv"], ((0, 0), (0, pad_cols)))
    whead = jnp.concatenate([wmu_p, wlv_p], axis=1).astype(compute_dtype)
    bmu_p = jnp.pad(params["bmu"], ((0, 0), (0, pad_cols)))
    blv_p = jnp.pad(params["blv"], ((0, 0), (0, pad_cols)))
    bhead = jnp.concatenate([bmu_p, blv_p], axis=1).astype(jnp.float32)
    b1 = params["b1"].astype(jnp.float32)
    b2 = params["b2"].astype(jnp.float32)
    b3 = params["b3"].astype(jnp.float32)

    d1, d2, d3 = w1.shape[1], w2.shape[1], w3.shape[1]

    # Row tiling: small tail waste, >=2 grid steps for megacore when m > 64.
    tm = _choose_tm(m, tm_max)
    m_pad = _round_up(m, tm)
    if m_pad != m:
        x2 = jnp.pad(x2, ((0, m_pad - m), (0, 0)))
        eps2 = jnp.pad(eps2, ((0, m_pad - m), (0, 0)))
    eps2 = jnp.pad(eps2, ((0, 0), (0, pad_cols)))
    grid = (m_pad // tm,)

    def row_map(i):
        return (i, 0)

    def const_map(i):
        return (0, 0)

    # VMEM footprint estimate -> raise scoped limit only if needed.
    w_isz = compute_dtype.itemsize
    weight_bytes = w_isz * (input_dim * d1 + d1 * d2 + d2 * d3
                            + d3 * 2 * out_dim_pad)
    bias_bytes = 4 * (d1 + d2 + d3 + 2 * out_dim_pad)
    io_bytes = 2 * 4 * tm * (input_dim + out_dim_pad + 3 * out_dim_pad)
    act_bytes = 4 * tm * (d1 + d2 + d3 + 5 * out_dim_pad)
    needed = 2 * (weight_bytes + bias_bytes) + io_bytes + 2 * act_bytes + (2 << 20)
    vmem_limit = None if needed <= (16 << 20) else int(min(needed, 64 << 20))

    flops = 2 * m_pad * (input_dim * d1 + d1 * d2 + d2 * d3
                         + d3 * 2 * out_dim_pad)
    transcendentals = m_pad * (d1 + d2 + d3 + out_dim_pad)
    bytes_accessed = (4 * m_pad * (input_dim + out_dim_pad + 3 * out_dim_pad)
                      + weight_bytes + bias_bytes)

    out_shape = jax.ShapeDtypeStruct((m_pad, 3 * out_dim_pad), jnp.float32)

    def _build(single_buffer_weights):
        wkw = ({"pipeline_mode": pl.Buffered(1)}
               if single_buffer_weights else {})

        def const_spec(shape):
            return pl.BlockSpec(shape, const_map, **wkw)

        in_specs = [
            pl.BlockSpec((tm, input_dim), row_map),        # x
            const_spec(w1.shape), const_spec(b1.shape),    # fc1
            const_spec(w2.shape), const_spec(b2.shape),    # fc2
            const_spec(w3.shape), const_spec(b3.shape),    # fc3
            const_spec(whead.shape), const_spec(bhead.shape),  # [mu | logvar]
            pl.BlockSpec((tm, out_dim_pad), row_map),      # eps
        ]
        return pl.pallas_call(
            functools.partial(_vae_mlp_kernel,
                              out_dim_pad=out_dim_pad,
                              compute_dtype=compute_dtype),
            out_shape=out_shape,
            grid=grid,
            in_specs=in_specs,
            out_specs=pl.BlockSpec((tm, 3 * out_dim_pad), row_map),
            compiler_params=pltpu.CompilerParams(
                dimension_semantics=("parallel",),
                vmem_limit_bytes=vmem_limit),
            cost_estimate=pl.CostEstimate(
                flops=flops,
                transcendentals=transcendentals,
                bytes_accessed=bytes_accessed),
        )

    operands = (x2, w1, b1, w2, b2, w3, b3, whead, bhead, eps2)
    try:
        packed = _build(True)(*operands)
    except Exception:
        # Fallback if single-buffered pipeline_mode is unsupported here.
        packed = _build(False)(*operands)

    mu = packed[:m, :out_dim]
    lv = packed[:m, out_dim_pad:out_dim_pad + out_dim]
    z = packed[:m, 2 * out_dim_pad:2 * out_dim_pad + out_dim]
    return z.reshape(shp), mu.reshape(shp), lv.reshape(shp)


def init_params(key, input_dim, proj_dim, n_comp, dtype=jnp.float32):
    """Deterministic parameter init (PyTorch-Linear-style uniform bounds)."""
    d1 = proj_dim * n_comp * 8
    d2 = proj_dim * n_comp * 4
    d3 = proj_dim * n_comp * 2
    do = proj_dim * n_comp

    dims = [(input_dim, d1), (d1, d2), (d2, d3), (d3, do), (d3, do)]
    names = ["1", "2", "3", "mu", "lv"]
    params = {"proj_dim": proj_dim, "n_comp": n_comp}
    for (fan_in, fan_out), name in zip(dims, names):
        key, kw, kb = jax.random.split(key, 3)
        bound = 1.0 / (fan_in ** 0.5)
        # stored as (in, out): kernel computes x @ W
        params["w" + name] = jax.random.uniform(
            kw, (fan_in, fan_out), dtype=dtype, minval=-bound, maxval=bound)
        params["b" + name] = jax.random.uniform(
            kb, (1, fan_out), dtype=dtype, minval=-bound, maxval=bound)
    return params


def _ref_forward(x, p, eps):
    h = jnp.tanh(x @ p["w1"] + p["b1"][0])
    h = jnp.tanh(h @ p["w2"] + p["b2"][0])
    h = jnp.tanh(h @ p["w3"] + p["b3"][0])
    mu_r = h @ p["wmu"] + p["bmu"][0]
    lv_r = h @ p["wlv"] + p["blv"][0]
    z_r = mu_r + eps * jnp.exp(0.5 * lv_r)
    shp = x.shape[:-1] + (p["proj_dim"], p["n_comp"])
    return z_r.reshape(shp), mu_r.reshape(shp), lv_r.reshape(shp)


if __name__ == "__main__":
    input_dim, proj_dim, n_comp = 32, 4, 2
    key = jax.random.PRNGKey(0)
    k_params, k_x, k_eps, k_x2, k_eps2 = jax.random.split(key, 5)
    params = init_params(k_params, input_dim, proj_dim, n_comp)

    # Case 1: small multi-dim batch, f32, single grid step.
    batch_shape = (2, 8)
    x = jax.random.normal(k_x, batch_shape + (input_dim,), dtype=jnp.float32)
    eps = jax.random.normal(k_eps, batch_shape + (proj_dim * n_comp,),
                            dtype=jnp.float32)
    z, mu, logvar = autoencoder_forward(x, params, eps)
    jax.block_until_ready((z, mu, logvar))
    z_r, mu_r, lv_r = _ref_forward(x, params, eps)
    assert z.shape == batch_shape + (proj_dim, n_comp)
    assert mu.shape == batch_shape + (proj_dim, n_comp)
    assert logvar.shape == batch_shape + (proj_dim, n_comp)
    assert jnp.allclose(z, z_r, atol=1e-5, rtol=1e-5)
    assert jnp.allclose(mu, mu_r, atol=1e-5, rtol=1e-5)
    assert jnp.allclose(logvar, lv_r, atol=1e-5, rtol=1e-5)

    # Case 2: larger 1-D batch -> multi-tile grid with row padding.
    m2 = 200
    x_big = jax.random.normal(k_x2, (m2, input_dim), dtype=jnp.float32)
    eps_big = jax.random.normal(k_eps2, (m2, proj_dim * n_comp),
                                dtype=jnp.float32)
    z2, mu2, lv2 = autoencoder_forward(x_big, params, eps_big)
    jax.block_until_ready((z2, mu2, lv2))
    z2r, mu2r, lv2r = _ref_forward(x_big, params, eps_big)
    assert jnp.allclose(z2, z2r, atol=1e-5, rtol=1e-5)
    assert jnp.allclose(mu2, mu2r, atol=1e-5, rtol=1e-5)
    assert jnp.allclose(lv2, lv2r, atol=1e-5, rtol=1e-5)

    # Case 3: bf16 weight/activation fast path (v6e/v7x), f32 accumulation.
    zb, mub, lvb = autoencoder_forward(x_big, params, eps_big,
                                       weights_dtype=jnp.bfloat16)
    jax.block_until_ready((zb, mub, lvb))
    assert zb.shape == z2.shape
    assert bool(jnp.all(jnp.isfinite(zb)))
    assert jnp.allclose(mub, mu2r, atol=0.25)
    assert jnp.allclose(zb, z2r, atol=0.25)

    print("KERNEL_OK")
</pallas_src>

<mosaic_0001>
module attributes {stable_mosaic.version = 11 : i64} {
  func.func @_vae_mlp_kernel(%arg0: i32, %arg1: memref<16x32xf32, #tpu.memory_space<vmem>>, %arg2: memref<32x64xf32, #tpu.memory_space<vmem>>, %arg3: memref<1x64xf32, #tpu.memory_space<vmem>>, %arg4: memref<64x32xf32, #tpu.memory_space<vmem>>, %arg5: memref<1x32xf32, #tpu.memory_space<vmem>>, %arg6: memref<32x16xf32, #tpu.memory_space<vmem>>, %arg7: memref<1x16xf32, #tpu.memory_space<vmem>>, %arg8: memref<16x256xf32, #tpu.memory_space<vmem>>, %arg9: memref<1x256xf32, #tpu.memory_space<vmem>>, %arg10: memref<16x128xf32, #tpu.memory_space<vmem>>, %arg11: memref<16x384xf32, #tpu.memory_space<vmem>>) attributes {dimension_semantics = [#tpu.dimension_semantics<parallel>], iteration_bounds = array<i64: 1>, scalar_prefetch = 0 : i64, scratch_operands = 0 : i64, tpu.core_type = #tpu.core_type<tc>, window_params = [{transform_indices = @transform_0, window_bounds = array<i64: 16, 32>}, {pipeline_mode = #tpu.pipeline_mode<synchronous>, transform_indices = @transform_1, window_bounds = array<i64: 32, 64>}, {pipeline_mode = #tpu.pipeline_mode<synchronous>, transform_indices = @transform_2, window_bounds = array<i64: 1, 64>}, {pipeline_mode = #tpu.pipeline_mode<synchronous>, transform_indices = @transform_3, window_bounds = array<i64: 64, 32>}, {pipeline_mode = #tpu.pipeline_mode<synchronous>, transform_indices = @transform_4, window_bounds = array<i64: 1, 32>}, {pipeline_mode = #tpu.pipeline_mode<synchronous>, transform_indices = @transform_5, window_bounds = array<i64: 32, 16>}, {pipeline_mode = #tpu.pipeline_mode<synchronous>, transform_indices = @transform_6, window_bounds = array<i64: 1, 16>}, {pipeline_mode = #tpu.pipeline_mode<synchronous>, transform_indices = @transform_7, window_bounds = array<i64: 16, 256>}, {pipeline_mode = #tpu.pipeline_mode<synchronous>, transform_indices = @transform_8, window_bounds = array<i64: 1, 256>}, {transform_indices = @transform_9, window_bounds = array<i64: 16, 128>}, {transform_indices = @transform_10, window_bounds = array<i64: 16, 384>}]} {
    %c0 = arith.constant 0 : index
    %c0_0 = arith.constant 0 : index
    %0 = vector.load %arg1[%c0, %c0_0] : memref<16x32xf32, #tpu.memory_space<vmem>>, vector<16x32xf32>
    %c0_1 = arith.constant 0 : index
    %c0_2 = arith.constant 0 : index
    %1 = vector.load %arg2[%c0_1, %c0_2] : memref<32x64xf32, #tpu.memory_space<vmem>>, vector<32x64xf32>
    %cst = arith.constant dense<0.000000e+00> : vector<16x64xf32>
    %2 = tpu.matmul %0, %1, %cst {dimension_numbers = #tpu.dot_dimension_numbers<[1], [0], [0], [1], [0, 0, 1, 1], [], []>} : vector<16x32xf32>, vector<32x64xf32>, vector<16x64xf32> -> vector<16x64xf32>
    %c0_3 = arith.constant 0 : index
    %c0_4 = arith.constant 0 : index
    %3 = vector.load %arg3[%c0_3, %c0_4] : memref<1x64xf32, #tpu.memory_space<vmem>>, vector<1x64xf32>
    %4 = vector.broadcast %3 : vector<1x64xf32> to vector<16x64xf32>
    %5 = arith.addf %2, %4 : vector<16x64xf32>
    %6 = math.tanh %5 : vector<16x64xf32>
    %c0_5 = arith.constant 0 : index
    %c0_6 = arith.constant 0 : index
    %7 = vector.load %arg4[%c0_5, %c0_6] : memref<64x32xf32, #tpu.memory_space<vmem>>, vector<64x32xf32>
    %cst_7 = arith.constant dense<0.000000e+00> : vector<16x32xf32>
    %8 = tpu.matmul %6, %7, %cst_7 {dimension_numbers = #tpu.dot_dimension_numbers<[1], [0], [0], [1], [0, 0, 1, 1], [], []>} : vector<16x64xf32>, vector<64x32xf32>, vector<16x32xf32> -> vector<16x32xf32>
    %c0_8 = arith.constant 0 : index
    %c0_9 = arith.constant 0 : index
    %9 = vector.load %arg5[%c0_8, %c0_9] : memref<1x32xf32, #tpu.memory_space<vmem>>, vector<1x32xf32>
    %10 = vector.broadcast %9 : vector<1x32xf32> to vector<16x32xf32>
    %11 = arith.addf %8, %10 : vector<16x32xf32>
    %12 = math.tanh %11 : vector<16x32xf32>
    %c0_10 = arith.constant 0 : index
    %c0_11 = arith.constant 0 : index
    %13 = vector.load %arg6[%c0_10, %c0_11] : memref<32x16xf32, #tpu.memory_space<vmem>>, vector<32x16xf32>
    %cst_12 = arith.constant dense<0.000000e+00> : vector<16x16xf32>
    %14 = tpu.matmul %12, %13, %cst_12 {dimension_numbers = #tpu.dot_dimension_numbers<[1], [0], [0], [1], [0, 0, 1, 1], [], []>} : vector<16x32xf32>, vector<32x16xf32>, vector<16x16xf32> -> vector<16x16xf32>
    %c0_13 = arith.constant 0 : index
    %c0_14 = arith.constant 0 : index
    %15 = vector.load %arg7[%c0_13, %c0_14] : memref<1x16xf32, #tpu.memory_space<vmem>>, vector<1x16xf32>
    %16 = vector.broadcast %15 : vector<1x16xf32> to vector<16x16xf32>
    %17 = arith.addf %14, %16 : vector<16x16xf32>
    %18 = math.tanh %17 : vector<16x16xf32>
    %c0_15 = arith.constant 0 : index
    %c0_16 = arith.constant 0 : index
    %19 = vector.load %arg8[%c0_15, %c0_16] : memref<16x256xf32, #tpu.memory_space<vmem>>, vector<16x256xf32>
    %cst_17 = arith.constant dense<0.000000e+00> : vector<16x256xf32>
    %20 = tpu.matmul %18, %19, %cst_17 {dimension_numbers = #tpu.dot_dimension_numbers<[1], [0], [0], [1], [0, 0, 1, 1], [], []>} : vector<16x16xf32>, vector<16x256xf32>, vector<16x256xf32> -> vector<16x256xf32>
    %c0_18 = arith.constant 0 : index
    %c0_19 = arith.constant 0 : index
    %21 = vector.load %arg9[%c0_18, %c0_19] : memref<1x256xf32, #tpu.memory_space<vmem>>, vector<1x256xf32>
    %22 = vector.broadcast %21 : vector<1x256xf32> to vector<16x256xf32>
    %23 = arith.addf %20, %22 : vector<16x256xf32>
    %24 = vector.extract_strided_slice %23 {offsets = [0, 0], sizes = [16, 128], strides = [1, 1]} : vector<16x256xf32> to vector<16x128xf32>
    %25 = vector.extract_strided_slice %23 {offsets = [0, 128], sizes = [16, 128], strides = [1, 1]} : vector<16x256xf32> to vector<16x128xf32>
    %c0_20 = arith.constant 0 : index
    %c0_21 = arith.constant 0 : index
    %26 = vector.load %arg10[%c0_20, %c0_21] : memref<16x128xf32, #tpu.memory_space<vmem>>, vector<16x128xf32>
    %cst_22 = arith.constant 5.000000e-01 : f32
    %27 = vector.broadcast %cst_22 : f32 to vector<16x128xf32>
    %28 = arith.mulf %27, %25 : vector<16x128xf32>
    %29 = math.exp %28 : vector<16x128xf32>
    %30 = arith.mulf %26, %29 : vector<16x128xf32>
    %31 = arith.addf %24, %30 : vector<16x128xf32>
    %c0_23 = arith.constant 0 : index
    %c0_24 = arith.constant 0 : index
    %32 = vector.load %arg11[%c0_23, %c0_24] : memref<16x384xf32, #tpu.memory_space<vmem>>, vector<16x256xf32>
    tpu.vector_store %arg11[%c0_23, %c0_24], %23 {strides = array<i32>} : memref<16x384xf32, #tpu.memory_space<vmem>>, vector<16x256xf32>,
    %c0_25 = arith.constant 0 : index
    %c256 = arith.constant 256 : index
    %33 = vector.load %arg11[%c0_25, %c256] : memref<16x384xf32, #tpu.memory_space<vmem>>, vector<16x128xf32>
    tpu.vector_store %arg11[%c0_25, %c256], %31 {strides = array<i32>} : memref<16x384xf32, #tpu.memory_space<vmem>>, vector<16x128xf32>,
    return
  }
  func.func @transform_0(%arg0: i32) -> (i32, i32) {
    %c0_i32 = arith.constant 0 : i32
    %c0_i32_0 = arith.constant 0 : i32
    return %arg0, %c0_i32 : i32, i32
  }
  func.func @transform_1(%arg0: i32) -> (i32, i32) {
    %c0_i32 = arith.constant 0 : i32
    %c0_i32_0 = arith.constant 0 : i32
    %c0_i32_1 = arith.constant 0 : i32
    return %c0_i32, %c0_i32_0 : i32, i32
  }
  func.func @transform_2(%arg0: i32) -> (i32, i32) {
    %c0_i32 = arith.constant 0 : i32
    %c0_i32_0 = arith.constant 0 : i32
    %c0_i32_1 = arith.constant 0 : i32
    return %c0_i32, %c0_i32_0 : i32, i32
  }
  func.func @transform_3(%arg0: i32) -> (i32, i32) {
    %c0_i32 = arith.constant 0 : i32
    %c0_i32_0 = arith.constant 0 : i32
    %c0_i32_1 = arith.constant 0 : i32
    return %c0_i32, %c0_i32_0 : i32, i32
  }
  func.func @transform_4(%arg0: i32) -> (i32, i32) {
    %c0_i32 = arith.constant 0 : i32
    %c0_i32_0 = arith.constant 0 : i32
    %c0_i32_1 = arith.constant 0 : i32
    return %c0_i32, %c0_i32_0 : i32, i32
  }
  func.func @transform_5(%arg0: i32) -> (i32, i32) {
    %c0_i32 = arith.constant 0 : i32
    %c0_i32_0 = arith.constant 0 : i32
    %c0_i32_1 = arith.constant 0 : i32
    return %c0_i32, %c0_i32_0 : i32, i32
  }
  func.func @transform_6(%arg0: i32) -> (i32, i32) {
    %c0_i32 = arith.constant 0 : i32
    %c0_i32_0 = arith.constant 0 : i32
    %c0_i32_1 = arith.constant 0 : i32
    return %c0_i32, %c0_i32_0 : i32, i32
  }
  func.func @transform_7(%arg0: i32) -> (i32, i32) {
    %c0_i32 = arith.constant 0 : i32
    %c0_i32_0 = arith.constant 0 : i32
    %c0_i32_1 = arith.constant 0 : i32
    return %c0_i32, %c0_i32_0 : i32, i32
  }
  func.func @transform_8(%arg0: i32) -> (i32, i32) {
    %c0_i32 = arith.constant 0 : i32
    %c0_i32_0 = arith.constant 0 : i32
    %c0_i32_1 = arith.constant 0 : i32
    return %c0_i32, %c0_i32_0 : i32, i32
  }
  func.func @transform_9(%arg0: i32) -> (i32, i32) {
    %c0_i32 = arith.constant 0 : i32
    %c0_i32_0 = arith.constant 0 : i32
    return %arg0, %c0_i32 : i32, i32
  }
  func.func @transform_10(%arg0: i32) -> (i32, i32) {
    %c0_i32 = arith.constant 0 : i32
    %c0_i32_0 = arith.constant 0 : i32
    return %arg0, %c0_i32 : i32, i32
  }
}

module attributes {stable_mosaic.version = 11 : i64} {
  func.func @_vae_mlp_kernel(%arg0: i32, %arg1: memref<16x32xf32, #tpu.memory_space<vmem>>, %arg2: memref<32x64xf32, #tpu.memory_space<vmem>>, %arg3: memref<1x64xf32, #tpu.memory_space<vmem>>, %arg4: memref<64x32xf32, #tpu.memory_space<vmem>>, %arg5: memref<1x32xf32, #tpu.memory_space<vmem>>, %arg6: memref<32x16xf32, #tpu.memory_space<vmem>>, %arg7: memref<1x16xf32, #tpu.memory_space<vmem>>, %arg8: memref<16x256xf32, #tpu.memory_space<vmem>>, %arg9: memref<1x256xf32, #tpu.memory_space<vmem>>, %arg10: memref<16x128xf32, #tpu.memory_space<vmem>>, %arg11: memref<16x384xf32, #tpu.memory_space<vmem>>) attributes {dimension_semantics = [#tpu.dimension_semantics<parallel>], iteration_bounds = array<i64: 1>, scalar_prefetch = 0 : i64, scratch_operands = 0 : i64, tpu.core_type = #tpu.core_type<tc>, window_params = [{transform_indices = @transform_0, window_bounds = array<i64: 16, 32>}, {pipeline_mode = #tpu.pipeline_mode<synchronous>, transform_indices = @transform_1, window_bounds = array<i64: 32, 64>}, {pipeline_mode = #tpu.pipeline_mode<synchronous>, transform_indices = @transform_2, window_bounds = array<i64: 1, 64>}, {pipeline_mode = #tpu.pipeline_mode<synchronous>, transform_indices = @transform_3, window_bounds = array<i64: 64, 32>}, {pipeline_mode = #tpu.pipeline_mode<synchronous>, transform_indices = @transform_4, window_bounds = array<i64: 1, 32>}, {pipeline_mode = #tpu.pipeline_mode<synchronous>, transform_indices = @transform_5, window_bounds = array<i64: 32, 16>}, {pipeline_mode = #tpu.pipeline_mode<synchronous>, transform_indices = @transform_6, window_bounds = array<i64: 1, 16>}, {pipeline_mode = #tpu.pipeline_mode<synchronous>, transform_indices = @transform_7, window_bounds = array<i64: 16, 256>}, {pipeline_mode = #tpu.pipeline_mode<synchronous>, transform_indices = @transform_8, window_bounds = array<i64: 1, 256>}, {transform_indices = @transform_9, window_bounds = array<i64: 16, 128>}, {transform_indices = @transform_10, window_bounds = array<i64: 16, 384>}]} {
    %c0 = arith.constant 0 : index
    %c0_0 = arith.constant 0 : index
    %0 = vector.load %arg1[%c0, %c0_0] : memref<16x32xf32, #tpu.memory_space<vmem>>, vector<16x32xf32>
    %c0_1 = arith.constant 0 : index
    %c0_2 = arith.constant 0 : index
    %1 = vector.load %arg2[%c0_1, %c0_2] : memref<32x64xf32, #tpu.memory_space<vmem>>, vector<32x64xf32>
    %cst = arith.constant dense<0.000000e+00> : vector<16x64xf32>
    %2 = tpu.matmul %0, %1, %cst {dimension_numbers = #tpu.dot_dimension_numbers<[1], [0], [0], [1], [0, 0, 1, 1], [], []>} : vector<16x32xf32>, vector<32x64xf32>, vector<16x64xf32> -> vector<16x64xf32>
    %c0_3 = arith.constant 0 : index
    %c0_4 = arith.constant 0 : index
    %3 = vector.load %arg3[%c0_3, %c0_4] : memref<1x64xf32, #tpu.memory_space<vmem>>, vector<1x64xf32>
    %4 = vector.broadcast %3 : vector<1x64xf32> to vector<16x64xf32>
    %5 = arith.addf %2, %4 : vector<16x64xf32>
    %6 = math.tanh %5 : vector<16x64xf32>
    %c0_5 = arith.constant 0 : index
    %c0_6 = arith.constant 0 : index
    %7 = vector.load %arg4[%c0_5, %c0_6] : memref<64x32xf32, #tpu.memory_space<vmem>>, vector<64x32xf32>
    %cst_7 = arith.constant dense<0.000000e+00> : vector<16x32xf32>
    %8 = tpu.matmul %6, %7, %cst_7 {dimension_numbers = #tpu.dot_dimension_numbers<[1], [0], [0], [1], [0, 0, 1, 1], [], []>} : vector<16x64xf32>, vector<64x32xf32>, vector<16x32xf32> -> vector<16x32xf32>
    %c0_8 = arith.constant 0 : index
    %c0_9 = arith.constant 0 : index
    %9 = vector.load %arg5[%c0_8, %c0_9] : memref<1x32xf32, #tpu.memory_space<vmem>>, vector<1x32xf32>
    %10 = vector.broadcast %9 : vector<1x32xf32> to vector<16x32xf32>
    %11 = arith.addf %8, %10 : vector<16x32xf32>
    %12 = math.tanh %11 : vector<16x32xf32>
    %c0_10 = arith.constant 0 : index
    %c0_11 = arith.constant 0 : index
    %13 = vector.load %arg6[%c0_10, %c0_11] : memref<32x16xf32, #tpu.memory_space<vmem>>, vector<32x16xf32>
    %cst_12 = arith.constant dense<0.000000e+00> : vector<16x16xf32>
    %14 = tpu.matmul %12, %13, %cst_12 {dimension_numbers = #tpu.dot_dimension_numbers<[1], [0], [0], [1], [0, 0, 1, 1], [], []>} : vector<16x32xf32>, vector<32x16xf32>, vector<16x16xf32> -> vector<16x16xf32>
    %c0_13 = arith.constant 0 : index
    %c0_14 = arith.constant 0 : index
    %15 = vector.load %arg7[%c0_13, %c0_14] : memref<1x16xf32, #tpu.memory_space<vmem>>, vector<1x16xf32>
    %16 = vector.broadcast %15 : vector<1x16xf32> to vector<16x16xf32>
    %17 = arith.addf %14, %16 : vector<16x16xf32>
    %18 = math.tanh %17 : vector<16x16xf32>
    %c0_15 = arith.constant 0 : index
    %c0_16 = arith.constant 0 : index
    %19 = vector.load %arg8[%c0_15, %c0_16] : memref<16x256xf32, #tpu.memory_space<vmem>>, vector<16x256xf32>
    %cst_17 = arith.constant dense<0.000000e+00> : vector<16x256xf32>
    %20 = tpu.matmul %18, %19, %cst_17 {dimension_numbers = #tpu.dot_dimension_numbers<[1], [0], [0], [1], [0, 0, 1, 1], [], []>} : vector<16x16xf32>, vector<16x256xf32>, vector<16x256xf32> -> vector<16x256xf32>
    %c0_18 = arith.constant 0 : index
    %c0_19 = arith.constant 0 : index
    %21 = vector.load %arg9[%c0_18, %c0_19] : memref<1x256xf32, #tpu.memory_space<vmem>>, vector<1x256xf32>
    %22 = vector.broadcast %21 : vector<1x256xf32> to vector<16x256xf32>
    %23 = arith.addf %20, %22 : vector<16x256xf32>
    %24 = vector.extract_strided_slice %23 {offsets = [0, 0], sizes = [16, 128], strides = [1, 1]} : vector<16x256xf32> to vector<16x128xf32>
    %25 = vector.extract_strided_slice %23 {offsets = [0, 128], sizes = [16, 128], strides = [1, 1]} : vector<16x256xf32> to vector<16x128xf32>
    %c0_20 = arith.constant 0 : index
    %c0_21 = arith.constant 0 : index
    %26 = vector.load %arg10[%c0_20, %c0_21] : memref<16x128xf32, #tpu.memory_space<vmem>>, vector<16x128xf32>
    %cst_22 = arith.constant 5.000000e-01 : f32
    %27 = vector.broadcast %cst_22 : f32 to vector<16x128xf32>
    %28 = arith.mulf %27, %25 : vector<16x128xf32>
    %29 = math.exp %28 : vector<16x128xf32>
    %30 = arith.mulf %26, %29 : vector<16x128xf32>
    %31 = arith.addf %24, %30 : vector<16x128xf32>
    %c0_23 = arith.constant 0 : index
    %c0_24 = arith.constant 0 : index
    %32 = vector.load %arg11[%c0_23, %c0_24] : memref<16x384xf32, #tpu.memory_space<vmem>>, vector<16x256xf32>
    tpu.vector_store %arg11[%c0_23, %c0_24], %23 {strides = array<i32>} : memref<16x384xf32, #tpu.memory_space<vmem>>, vector<16x256xf32>,
    %c0_25 = arith.constant 0 : index
    %c256 = arith.constant 256 : index
    %33 = vector.load %arg11[%c0_25, %c256] : memref<16x384xf32, #tpu.memory_space<vmem>>, vector<16x128xf32>
    tpu.vector_store %arg11[%c0_25, %c256], %31 {strides = array<i32>} : memref<16x384xf32, #tpu.memory_space<vmem>>, vector<16x128xf32>,
    return
  }
  func.func @transform_0(%arg0: i32) -> (i32, i32) {
    %c0_i32 = arith.constant 0 : i32
    %c0_i32_0 = arith.constant 0 : i32
    return %arg0, %c0_i32 : i32, i32
  }
  func.func @transform_1(%arg0: i32) -> (i32, i32) {
    %c0_i32 = arith.constant 0 : i32
    %c0_i32_0 = arith.constant 0 : i32
    %c0_i32_1 = arith.constant 0 : i32
    return %c0_i32, %c0_i32_0 : i32, i32
  }
  func.func @transform_2(%arg0: i32) -> (i32, i32) {
    %c0_i32 = arith.constant 0 : i32
    %c0_i32_0 = arith.constant 0 : i32
    %c0_i32_1 = arith.constant 0 : i32
    return %c0_i32, %c0_i32_0 : i32, i32
  }
  func.func @transform_3(%arg0: i32) -> (i32, i32) {
    %c0_i32 = arith.constant 0 : i32
    %c0_i32_0 = arith.constant 0 : i32
    %c0_i32_1 = arith.constant 0 : i32
    return %c0_i32, %c0_i32_0 : i32, i32
  }
  func.func @transform_4(%arg0: i32) -> (i32, i32) {
    %c0_i32 = arith.constant 0 : i32
    %c0_i32_0 = arith.constant 0 : i32
    %c0_i32_1 = arith.constant 0 : i32
    return %c0_i32, %c0_i32_0 : i32, i32
  }
  func.func @transform_5(%arg0: i32) -> (i32, i32) {
    %c0_i32 = arith.constant 0 : i32
    %c0_i32_0 = arith.constant 0 : i32
    %c0_i32_1 = arith.constant 0 : i32
    return %c0_i32, %c0_i32_0 : i32, i32
  }
  func.func @transform_6(%arg0: i32) -> (i32, i32) {
    %c0_i32 = arith.constant 0 : i32
    %c0_i32_0 = arith.constant 0 : i32
    %c0_i32_1 = arith.constant 0 : i32
    return %c0_i32, %c0_i32_0 : i32, i32
  }
  func.func @transform_7(%arg0: i32) -> (i32, i32) {
    %c0_i32 = arith.constant 0 : i32
    %c0_i32_0 = arith.constant 0 : i32
    %c0_i32_1 = arith.constant 0 : i32
    return %c0_i32, %c0_i32_0 : i32, i32
  }
  func.func @transform_8(%arg0: i32) -> (i32, i32) {
    %c0_i32 = arith.constant 0 : i32
    %c0_i32_0 = arith.constant 0 : i32
    %c0_i32_1 = arith.constant 0 : i32
    return %c0_i32, %c0_i32_0 : i32, i32
  }
  func.func @transform_9(%arg0: i32) -> (i32, i32) {
    %c0_i32 = arith.constant 0 : i32
    %c0_i32_0 = arith.constant 0 : i32
    return %arg0, %c0_i32 : i32, i32
  }
  func.func @transform_10(%arg0: i32) -> (i32, i32) {
    %c0_i32 = arith.constant 0 : i32
    %c0_i32_0 = arith.constant 0 : i32
    return %arg0, %c0_i32 : i32, i32
  }
}

</mosaic_0001>

<bundles_post_ra>
// kernel: tpu_custom_call.1
= control target key start
LH: loop header
LB: loop body
LE: loop exit
PB: predicated region body
PF: predicated region fallthrough
CT: control target
= control target key end

     0   :  { %s469_s0 = inlined_call_operand.vmem [shape: f32[16,32], index: 0, kind: input, shape index: {}]   ;;  %s470_s1 = inlined_call_operand.vmem [shape: f32[32,64], index: 1, kind: input, shape index: {}]   ;;  %s471_s2 = inlined_call_operand.vmem [shape: f32[1,64], index: 2, kind: input, shape index: {}]   ;;  %s472_s3 = inlined_call_operand.vmem [shape: f32[64,32], index: 3, kind: input, shape index: {}]   ;;  %s473_s4 = inlined_call_operand.vmem [shape: f32[1,32], index: 4, kind: input, shape index: {}]   ;;  %s474_s5 = inlined_call_operand.vmem [shape: f32[32,16], index: 5, kind: input, shape index: {}]   ;;  %s475_s6 = inlined_call_operand.vmem [shape: f32[1,16], index: 6, kind: input, shape index: {}]   ;;  %s476_s7 = inlined_call_operand.vmem [shape: f32[16,256], index: 7, kind: input, shape index: {}]   ;;  %s477_s8 = inlined_call_operand.vmem [shape: f32[1,256], index: 8, kind: input, shape index: {}]   ;;  %s478_s9 = inlined_call_operand.vmem [shape: f32[16,128], index: 9, kind: input, shape index: {}]   ;;  %s479_s10 = inlined_call_operand.hbm [shape: f32[16,384], index: 10, kind: output, shape index: {}]  }
   0x1   :  { %v41_v0 = vld [vmem:[%s470_s1 + $0x18] sm:$0xff]  ;;  %v40_v1 = vld [vmem:[%s470_s1 + $0x10] sm:$0xff]  ;;  %v39_v2 = vld [vmem:[%s470_s1 + $0x8] sm:$0xff] }
   0x2   :  { %65 = vmatpush.msra.mxu0 %v41_v0  ;;  %v85_v3 = vld [vmem:[%s472_s3 + $0x38] sm:$0xff]  ;;  %v84_v4 = vld [vmem:[%s472_s3 + $0x30] sm:$0xff]  ;;  %v38_v5 = vld [vmem:[%s470_s1] sm:$0xff] }
   0x3   :  { %105 = vmatpush.msra.mxu1 %v85_v3  ;;  %v83_v6 = vld [vmem:[%s472_s3 + $0x28] sm:$0xff] }
   0x4   :  { %66 = vmatpush.msra.mxu0 %v40_v1 }
   0x5   :  { %15 = vsyncpa [#allocation3], 0  ;;  %v36_v7 = vld [vmem:[%s469_s0] sm:$0xff]  ;;  %vm46_vm0 = vcmask 261120   ;;  %106 = vmatpush.msra.mxu1 %v84_v4  ;;  %v37_v8 = vld [vmem:[%s469_s0 + $0x8] sm:$0xff]  ;;  %vm90_vm1 = vcmask 523264  }
   0x6   :  { %67 = vmatpush.msra.mxu0 %v39_v2  ;;  %v82_v9 = vld [vmem:[%s472_s3 + $0x20] sm:$0xff]  ;;  %v81_v10 = vld [vmem:[%s472_s3 + $0x18] sm:$0xff]  ;;  %v80_v11 = vld [vmem:[%s472_s3 + $0x10] sm:$0xff]  ;;  %vm171_vm2 = vcmask 130048   ;;  %s320_s18 = smov [#allocation2]   ;;  %s248_s22 = sshll.u32 %s479_s10, 4  ;;  %s249_s22 = int_to_ptr.hbm [resolvable:$true] %s248_s22 }
   0x7   :  { %107 = vmatpush.msra.mxu1 %v83_v6  ;;  %v79_v12 = vld [vmem:[%s472_s3 + $0x8] sm:$0xff]  ;;  %v78_v13 = vld [vmem:[%s472_s3] sm:$0xff]  ;;  %v125_v21 = vld [vmem:[%s474_s5 + $0x18] sm:$0xff]  ;;  %s246_s19 = sshll.u32 %s320_s18, 4  ;;  %s321_s3 = smov 384   ;;  %s247_s19 = int_to_ptr.vmem [resolvable:$true] %s246_s19 }
   0x8   :  { %68 = vmatpush.msra.mxu0 %v38_v5  ;;  %v275_v14 = vld [vmem:[%s471_s2] ss:$0 sm:$0xff]  ;;  %148 = vmatpush.msra.mxu2 %v125_v21  ;;  %v124_v22 = vld [vmem:[%s474_s5 + $0x10] sm:$0xff]  ;;  %v123_v23 = vld [vmem:[%s474_s5 + $0x8] sm:$0xff]  ;;  %s322_s23 = smov 24  }
   0x9   :  { %260 = vmatmul.msk.f32.vlgmr.msra.gmra.mxu0 %vm46_vm0, %v36_v7  ;;  %108 = vmatpush.msra.mxu1 %v82_v9  ;;  %v122_v24 = vld [vmem:[%s474_s5] sm:$0xff]  ;;  %v163_v32 = vld [vmem:[%s476_s7 + $0x10] sm:$0xff]  ;;  %v164_v34 = vld [vmem:[%s476_s7 + $0x18] sm:$0xff] }
   0xa   :  { %149 = vmatpush.msra.mxu2 %v124_v22  ;;  %v276_v25 = vld [vmem:[%s473_s4] ss:$0 sm:$0xff]  ;;  %192 = vmatpush.msrb.mxu0 %v163_v32  ;;  %v162_v35 = vld [vmem:[%s476_s7 + $0x8] sm:$0xff] }
   0xb   :  { %109 = vmatpush.msra.mxu1 %v81_v10  ;;  %270 = vmatpush.msra.mxu3 %v163_v32  ;;  %v161_v33 = vld [vmem:[%s476_s7] sm:$0xff]  ;;  %v225_v62 = vld [vmem:[%s478_s9 + $0x8] sm:$0xff] }
   0xc   :  { %150 = vmatpush.msra.mxu2 %v123_v23  ;;  %193 = vmatpush.msrb.mxu0 %v161_v33  ;;  %v277_v36 = vld [vmem:[%s475_s6] ss:$0 sm:$0xff] }
   0xd   :  { %110 = vmatpush.msra.mxu1 %v80_v11  ;;  %271 = vmatpush.msra.mxu3 %v161_v33  ;;  %v165_v43 = vld [vmem:[%s477_s8] sm:$0x3] }
   0xe   :  { %151 = vmatpush.msra.mxu2 %v122_v24  ;;  %v167_v44 = vperm.slane %v165_v43, 0  ;;  %v168_v49 = vperm.slane %v165_v43, 1  ;;  %v224_v56 = vld [vmem:[%s478_s9] sm:$0xff] }
   0xf   :  { %111 = vmatpush.msra.mxu1 %v79_v12  ;;  %215 = vmatpush.msrb.mxu3 %v164_v34 }
  0x11   :  { %261 = vmatmul.msk.f32.gmra.mxu0 %vm46_vm0, %v37_v8  ;;  %112 = vmatpush.msra.mxu1 %v78_v13 }
  0x12   :  { %216 = vmatpush.msrb.mxu3 %v162_v35 }
  0x86   :  { %v70_v15 = vpop.f32.mrf.mxu0 }
  0x87   :  { %v71_v16 = vadd.f32 %v275_v14, %v70_v15 }
  0x89   :  { %278 = vtanh.f32 %v71_v16 }
  0x8e   :  { %v73_v17 = vpop.f32.mrf.mxu0 }
  0x8f   :  { %v279_v18 = vpop.eup %278  ;;  %v74_v19 = vadd.f32 %v275_v14, %v73_v17 }
  0x90   :  { %262 = vmatmul.msk.f32.vlgmr.msra.gmra.mxu1 %vm90_vm1, %v279_v18 }
  0x91   :  { %280 = vtanh.f32 %v74_v19 }
  0x97   :  { %v281_v20 = vpop.eup %280 }
  0x98   :  { %263 = vmatmul.msk.f32.gmra.mxu1 %vm90_vm1, %v281_v20 }
 0x10d   :  { %v114_v26 = vpop.f32.mrf.mxu1 }
 0x10e   :  { %v115_v27 = vadd.f32 %v276_v25, %v114_v26 }
 0x110   :  { %282 = vtanh.f32 %v115_v27 }
 0x115   :  { %v117_v28 = vpop.f32.mrf.mxu1 }
 0x116   :  { %v283_v29 = vpop.eup %282  ;;  %v118_v30 = vadd.f32 %v276_v25, %v117_v28 }
 0x117   :  { %264 = vmatmul.msk.f32.vlgmr.msra.gmra.mxu2 %vm46_vm0, %v283_v29 }
 0x118   :  { %284 = vtanh.f32 %v118_v30 }
 0x11e   :  { %v285_v31 = vpop.eup %284 }
 0x11f   :  { %265 = vmatmul.msk.f32.gmra.mxu2 %vm46_vm0, %v285_v31 }
 0x19a   :  { %v153_v37 = vpop.f32.mrf.mxu2 }
 0x19b   :  { %v154_v38 = vadd.f32 %v277_v36, %v153_v37 }
 0x19d   :  { %286 = vtanh.f32 %v154_v38 }
 0x1a2   :  { %v156_v39 = vpop.f32.mrf.mxu2 }
 0x1a3   :  { %v287_v40 = vpop.eup %286  ;;  %v157_v41 = vadd.f32 %v277_v36, %v156_v39 }
 0x1a4   :  { %266 = vmatmul.msk.f32.vlgmr.msrb.gmra.mxu0 %vm171_vm2, %v287_v40 }
 0x1a5   :  { %288 = vtanh.f32 %v157_v41 }
 0x1ab   :  { %v289_v42 = vpop.eup %288 }
 0x1ac   :  { %267 = vmatmul.msk.f32.vlgmr.msra.gmra.mxu3 %vm171_vm2, %v289_v42 }
 0x1b4   :  { %268 = vmatmul.msk.f32.vlgmr.msrb.gmra.mxu3 %vm171_vm2, %v287_v40 }
 0x1bc   :  { %269 = vmatmul.msk.f32.gmra.mxu3 %vm171_vm2, %v289_v42 }
 0x221   :  { %v195_v45 = vpop.f32.mrf.mxu0 }
 0x222   :  { %v196_v46 = vadd.f32 %v195_v45, %v167_v44 }
 0x224   :  { %236 = vst [vmem:[#allocation2] sm:$0xff] %v196_v46 }
 0x22f   :  { %v198_v47 = vpop.f32.mrf.mxu3 }
 0x230   :  { %v199_v48 = vadd.f32 %v198_v47, %v167_v44 }
 0x232   :  { %238 = vst [vmem:[#allocation2 + $0x18] sm:$0xff] %v199_v48 }
 0x237   :  { %v218_v50 = vpop.f32.mrf.mxu3 }
 0x238   :  { %v219_v51 = vadd.f32 %v218_v50, %v168_v49 }
 0x23a   :  { %v226_v52 = vmul.f32 0.5, %v219_v51  ;;  %237 = vst [vmem:[#allocation2 + $0x8] sm:$0xff] %v219_v51 }
 0x23c   :  { %v228_v53 = vmul.f32 1.442695, %v226_v52 }
 0x23e   :  { %290 = vpow2.f32 %v228_v53 }
 0x23f   :  { %v221_v54 = vpop.f32.mrf.mxu3 }
 0x240   :  { %v222_v55 = vadd.f32 %v221_v54, %v168_v49 }
 0x242   :  { %v227_v57 = vmul.f32 0.5, %v222_v55  ;;  %239 = vst [vmem:[#allocation2 + $0x20] sm:$0xff] %v222_v55 }
 0x244   :  { %v291_v58 = vpop.eup %290  ;;  %v230_v59 = vmul.f32 1.442695, %v227_v57 }
 0x245   :  { %v232_v60 = vmul.f32 %v291_v58, %v224_v56 }
 0x246   :  { %292 = vpow2.f32 %v230_v59 }
 0x247   :  { %v234_v61 = vadd.f32 %v232_v60, %v196_v46 }
 0x249   :  { %240 = vst [vmem:[#allocation2 + $0x10] sm:$0xff] %v234_v61 }
 0x24c   :  { %v293_v63 = vpop.eup %292 }
 0x24d   :  { %v233_v0 = vmul.f32 %v293_v63, %v225_v62 }
 0x24f   :  { %v235_v1 = vadd.f32 %v233_v0, %v199_v48 }
 0x251   :  { %241 = vst [vmem:[#allocation2 + $0x28] sm:$0xff] %v235_v1 }
 0x252   :  { %254 = dma.vmem_to_hbm [thread:$0]  %s247_s19, 768, %s249_s22, [#allocation3], %s321_s3, %s321_s3, %s322_s23  }
 0x253   :  { %318 = dma.done.wait [#allocation3], 768  }
 0x254   :  { %319 = vsyncadd [#allocation3], 4294966528 }
 0x255   :  { %259 = vsyncpa [#allocation3], 1 }

// kernel: tpu_custom_call.1
= control target key start
LH: loop header
LB: loop body
LE: loop exit
PB: predicated region body
PF: predicated region fallthrough
CT: control target
= control target key end

     0   :  { %s469_s0 = inlined_call_operand.vmem [shape: f32[16,32], index: 0, kind: input, shape index: {}]   ;;  %s470_s1 = inlined_call_operand.vmem [shape: f32[32,64], index: 1, kind: input, shape index: {}]   ;;  %s471_s2 = inlined_call_operand.vmem [shape: f32[1,64], index: 2, kind: input, shape index: {}]   ;;  %s472_s3 = inlined_call_operand.vmem [shape: f32[64,32], index: 3, kind: input, shape index: {}]   ;;  %s473_s4 = inlined_call_operand.vmem [shape: f32[1,32], index: 4, kind: input, shape index: {}]   ;;  %s474_s5 = inlined_call_operand.vmem [shape: f32[32,16], index: 5, kind: input, shape index: {}]   ;;  %s475_s6 = inlined_call_operand.vmem [shape: f32[1,16], index: 6, kind: input, shape index: {}]   ;;  %s476_s7 = inlined_call_operand.vmem [shape: f32[16,256], index: 7, kind: input, shape index: {}]   ;;  %s477_s8 = inlined_call_operand.vmem [shape: f32[1,256], index: 8, kind: input, shape index: {}]   ;;  %s478_s9 = inlined_call_operand.vmem [shape: f32[16,128], index: 9, kind: input, shape index: {}]   ;;  %s479_s10 = inlined_call_operand.hbm [shape: f32[16,384], index: 10, kind: output, shape index: {}]  }
   0x1   :  { %v41_v0 = vld [vmem:[%s470_s1 + $0x18] sm:$0xff]  ;;  %v40_v1 = vld [vmem:[%s470_s1 + $0x10] sm:$0xff]  ;;  %v39_v2 = vld [vmem:[%s470_s1 + $0x8] sm:$0xff] }
   0x2   :  { %65 = vmatpush.msra.mxu0 %v41_v0  ;;  %v85_v3 = vld [vmem:[%s472_s3 + $0x38] sm:$0xff]  ;;  %v84_v4 = vld [vmem:[%s472_s3 + $0x30] sm:$0xff]  ;;  %v38_v5 = vld [vmem:[%s470_s1] sm:$0xff] }
   0x3   :  { %105 = vmatpush.msra.mxu1 %v85_v3  ;;  %v83_v6 = vld [vmem:[%s472_s3 + $0x28] sm:$0xff] }
   0x4   :  { %66 = vmatpush.msra.mxu0 %v40_v1 }
   0x5   :  { %15 = vsyncpa [#allocation3], 0  ;;  %v36_v7 = vld [vmem:[%s469_s0] sm:$0xff]  ;;  %vm46_vm0 = vcmask 261120   ;;  %106 = vmatpush.msra.mxu1 %v84_v4  ;;  %v37_v8 = vld [vmem:[%s469_s0 + $0x8] sm:$0xff]  ;;  %vm90_vm1 = vcmask 523264  }
   0x6   :  { %67 = vmatpush.msra.mxu0 %v39_v2  ;;  %v82_v9 = vld [vmem:[%s472_s3 + $0x20] sm:$0xff]  ;;  %v81_v10 = vld [vmem:[%s472_s3 + $0x18] sm:$0xff]  ;;  %v80_v11 = vld [vmem:[%s472_s3 + $0x10] sm:$0xff]  ;;  %vm171_vm2 = vcmask 130048   ;;  %s320_s18 = smov [#allocation2]   ;;  %s248_s22 = sshll.u32 %s479_s10, 4  ;;  %s249_s22 = int_to_ptr.hbm [resolvable:$true] %s248_s22 }
   0x7   :  { %107 = vmatpush.msra.mxu1 %v83_v6  ;;  %v79_v12 = vld [vmem:[%s472_s3 + $0x8] sm:$0xff]  ;;  %v78_v13 = vld [vmem:[%s472_s3] sm:$0xff]  ;;  %v125_v21 = vld [vmem:[%s474_s5 + $0x18] sm:$0xff]  ;;  %s246_s19 = sshll.u32 %s320_s18, 4  ;;  %s321_s3 = smov 384   ;;  %s247_s19 = int_to_ptr.vmem [resolvable:$true] %s246_s19 }
   0x8   :  { %68 = vmatpush.msra.mxu0 %v38_v5  ;;  %v275_v14 = vld [vmem:[%s471_s2] ss:$0 sm:$0xff]  ;;  %148 = vmatpush.msra.mxu2 %v125_v21  ;;  %v124_v22 = vld [vmem:[%s474_s5 + $0x10] sm:$0xff]  ;;  %v123_v23 = vld [vmem:[%s474_s5 + $0x8] sm:$0xff]  ;;  %s322_s23 = smov 24  }
   0x9   :  { %260 = vmatmul.msk.f32.vlgmr.msra.gmra.mxu0 %vm46_vm0, %v36_v7  ;;  %108 = vmatpush.msra.mxu1 %v82_v9  ;;  %v122_v24 = vld [vmem:[%s474_s5] sm:$0xff]  ;;  %v163_v32 = vld [vmem:[%s476_s7 + $0x10] sm:$0xff]  ;;  %v164_v34 = vld [vmem:[%s476_s7 + $0x18] sm:$0xff] }
   0xa   :  { %149 = vmatpush.msra.mxu2 %v124_v22  ;;  %v276_v25 = vld [vmem:[%s473_s4] ss:$0 sm:$0xff]  ;;  %192 = vmatpush.msrb.mxu0 %v163_v32  ;;  %v162_v35 = vld [vmem:[%s476_s7 + $0x8] sm:$0xff] }
   0xb   :  { %109 = vmatpush.msra.mxu1 %v81_v10  ;;  %270 = vmatpush.msra.mxu3 %v163_v32  ;;  %v161_v33 = vld [vmem:[%s476_s7] sm:$0xff]  ;;  %v225_v62 = vld [vmem:[%s478_s9 + $0x8] sm:$0xff] }
   0xc   :  { %150 = vmatpush.msra.mxu2 %v123_v23  ;;  %193 = vmatpush.msrb.mxu0 %v161_v33  ;;  %v277_v36 = vld [vmem:[%s475_s6] ss:$0 sm:$0xff] }
   0xd   :  { %110 = vmatpush.msra.mxu1 %v80_v11  ;;  %271 = vmatpush.msra.mxu3 %v161_v33  ;;  %v165_v43 = vld [vmem:[%s477_s8] sm:$0x3] }
   0xe   :  { %151 = vmatpush.msra.mxu2 %v122_v24  ;;  %v167_v44 = vperm.slane %v165_v43, 0  ;;  %v168_v49 = vperm.slane %v165_v43, 1  ;;  %v224_v56 = vld [vmem:[%s478_s9] sm:$0xff] }
   0xf   :  { %111 = vmatpush.msra.mxu1 %v79_v12  ;;  %215 = vmatpush.msrb.mxu3 %v164_v34 }
  0x11   :  { %261 = vmatmul.msk.f32.gmra.mxu0 %vm46_vm0, %v37_v8  ;;  %112 = vmatpush.msra.mxu1 %v78_v13 }
  0x12   :  { %216 = vmatpush.msrb.mxu3 %v162_v35 }
  0x86   :  { %v70_v15 = vpop.f32.mrf.mxu0 }
  0x87   :  { %v71_v16 = vadd.f32 %v275_v14, %v70_v15 }
  0x89   :  { %278 = vtanh.f32 %v71_v16 }
  0x8e   :  { %v73_v17 = vpop.f32.mrf.mxu0 }
  0x8f   :  { %v279_v18 = vpop.eup %278  ;;  %v74_v19 = vadd.f32 %v275_v14, %v73_v17 }
  0x90   :  { %262 = vmatmul.msk.f32.vlgmr.msra.gmra.mxu1 %vm90_vm1, %v279_v18 }
  0x91   :  { %280 = vtanh.f32 %v74_v19 }
  0x97   :  { %v281_v20 = vpop.eup %280 }
  0x98   :  { %263 = vmatmul.msk.f32.gmra.mxu1 %vm90_vm1, %v281_v20 }
 0x10d   :  { %v114_v26 = vpop.f32.mrf.mxu1 }
 0x10e   :  { %v115_v27 = vadd.f32 %v276_v25, %v114_v26 }
 0x110   :  { %282 = vtanh.f32 %v115_v27 }
 0x115   :  { %v117_v28 = vpop.f32.mrf.mxu1 }
 0x116   :  { %v283_v29 = vpop.eup %282  ;;  %v118_v30 = vadd.f32 %v276_v25, %v117_v28 }
 0x117   :  { %264 = vmatmul.msk.f32.vlgmr.msra.gmra.mxu2 %vm46_vm0, %v283_v29 }
 0x118   :  { %284 = vtanh.f32 %v118_v30 }
 0x11e   :  { %v285_v31 = vpop.eup %284 }
 0x11f   :  { %265 = vmatmul.msk.f32.gmra.mxu2 %vm46_vm0, %v285_v31 }
 0x19a   :  { %v153_v37 = vpop.f32.mrf.mxu2 }
 0x19b   :  { %v154_v38 = vadd.f32 %v277_v36, %v153_v37 }
 0x19d   :  { %286 = vtanh.f32 %v154_v38 }
 0x1a2   :  { %v156_v39 = vpop.f32.mrf.mxu2 }
 0x1a3   :  { %v287_v40 = vpop.eup %286  ;;  %v157_v41 = vadd.f32 %v277_v36, %v156_v39 }
 0x1a4   :  { %266 = vmatmul.msk.f32.vlgmr.msrb.gmra.mxu0 %vm171_vm2, %v287_v40 }
 0x1a5   :  { %288 = vtanh.f32 %v157_v41 }
 0x1ab   :  { %v289_v42 = vpop.eup %288 }
 0x1ac   :  { %267 = vmatmul.msk.f32.vlgmr.msra.gmra.mxu3 %vm171_vm2, %v289_v42 }
 0x1b4   :  { %268 = vmatmul.msk.f32.vlgmr.msrb.gmra.mxu3 %vm171_vm2, %v287_v40 }
 0x1bc   :  { %269 = vmatmul.msk.f32.gmra.mxu3 %vm171_vm2, %v289_v42 }
 0x221   :  { %v195_v45 = vpop.f32.mrf.mxu0 }
 0x222   :  { %v196_v46 = vadd.f32 %v195_v45, %v167_v44 }
 0x224   :  { %236 = vst [vmem:[#allocation2] sm:$0xff] %v196_v46 }
 0x22f   :  { %v198_v47 = vpop.f32.mrf.mxu3 }
 0x230   :  { %v199_v48 = vadd.f32 %v198_v47, %v167_v44 }
 0x232   :  { %238 = vst [vmem:[#allocation2 + $0x18] sm:$0xff] %v199_v48 }
 0x237   :  { %v218_v50 = vpop.f32.mrf.mxu3 }
 0x238   :  { %v219_v51 = vadd.f32 %v218_v50, %v168_v49 }
 0x23a   :  { %v226_v52 = vmul.f32 0.5, %v219_v51  ;;  %237 = vst [vmem:[#allocation2 + $0x8] sm:$0xff] %v219_v51 }
 0x23c   :  { %v228_v53 = vmul.f32 1.442695, %v226_v52 }
 0x23e   :  { %290 = vpow2.f32 %v228_v53 }
 0x23f   :  { %v221_v54 = vpop.f32.mrf.mxu3 }
 0x240   :  { %v222_v55 = vadd.f32 %v221_v54, %v168_v49 }
 0x242   :  { %v227_v57 = vmul.f32 0.5, %v222_v55  ;;  %239 = vst [vmem:[#allocation2 + $0x20] sm:$0xff] %v222_v55 }
 0x244   :  { %v291_v58 = vpop.eup %290  ;;  %v230_v59 = vmul.f32 1.442695, %v227_v57 }
 0x245   :  { %v232_v60 = vmul.f32 %v291_v58, %v224_v56 }
 0x246   :  { %292 = vpow2.f32 %v230_v59 }
 0x247   :  { %v234_v61 = vadd.f32 %v232_v60, %v196_v46 }
 0x249   :  { %240 = vst [vmem:[#allocation2 + $0x10] sm:$0xff] %v234_v61 }
 0x24c   :  { %v293_v63 = vpop.eup %292 }
 0x24d   :  { %v233_v0 = vmul.f32 %v293_v63, %v225_v62 }
 0x24f   :  { %v235_v1 = vadd.f32 %v233_v0, %v199_v48 }
 0x251   :  { %241 = vst [vmem:[#allocation2 + $0x28] sm:$0xff] %v235_v1 }
 0x252   :  { %254 = dma.vmem_to_hbm [thread:$0]  %s247_s19, 768, %s249_s22, [#allocation3], %s321_s3, %s321_s3, %s322_s23  }
 0x253   :  { %318 = dma.done.wait [#allocation3], 768  }
 0x254   :  { %319 = vsyncadd [#allocation3], 4294966528 }
 0x255   :  { %259 = vsyncpa [#allocation3], 1 }

</bundles_post_ra>
